<compile_context>
chip_gen: v7x
topology: tpu7x:2x2x1
jax: 0.10.0
libtpu: 0.0.40
codegen_flags: <defaults>
</compile_context>

<pallas_src>
import functools

import jax
import jax.numpy as jnp
from jax import lax
from jax.experimental import pallas as pl
from jax.experimental.pallas import tpu as pltpu

EPS = 1e-5


def mmff_kernel(x_ref, g1_ref, b1_ref, w1_ref, cb1_ref,
                g2_ref, b2_ref, w2_ref, cb2_ref, o_ref, *, W):
    # x_ref:  (3*Cin, n)  with n = B*H*W on the lane axis
    # g1/b1:  (3*Cin, 1)          w1: (3*Cout, 3*Cin)  block-diagonal
    # cb1/g2/b2/cb2: (3*Cout, 1)  w2: (3*Cout, 9*3*Cout) block-structured
    # o_ref:  (3*Cout, n)
    x = x_ref[...].astype(jnp.float32)
    n = x.shape[1]
    inv_n = 1.0 / n

    # ---- BatchNorm #1 (training mode, biased batch stats), single pass ----
    mean1 = jnp.sum(x, axis=1, keepdims=True) * inv_n
    ex2_1 = jnp.sum(x * x, axis=1, keepdims=True) * inv_n
    var1 = jnp.maximum(ex2_1 - mean1 * mean1, 0.0)
    xn = (x - mean1) * (lax.rsqrt(var1 + EPS) * g1_ref[...]) + b1_ref[...]

    # ---- Conv 1x1 over all 3 branches: block-diagonal channel matmul (MXU) ----
    y = jnp.dot(w1_ref[...], xn, preferred_element_type=jnp.float32) + cb1_ref[...]

    # ---- BatchNorm #2, single pass ----
    mean2 = jnp.sum(y, axis=1, keepdims=True) * inv_n
    ex2_2 = jnp.sum(y * y, axis=1, keepdims=True) * inv_n
    var2 = jnp.maximum(ex2_2 - mean2 * mean2, 0.0)
    yn = (y - mean2) * (lax.rsqrt(var2 + EPS) * g2_ref[...]) + b2_ref[...]

    # ---- Conv 3x3 VALID as one fused im2col matmul ----
    # tap (di, dj) needs yn[:, f + di*W + dj]; with the flat (b, h, w) lane
    # axis that's a lane roll.  Wrapped / cross-row columns only affect output
    # positions with h >= H-2 or w >= W-2, which the wrapper crops away.
    taps = []
    for di in range(3):
        for dj in range(3):
            k = di * W + dj
            if k == 0:
                taps.append(yn)
            else:
                taps.append(pltpu.roll(yn, shift=n - k, axis=1))
    patches = jnp.concatenate(taps, axis=0)          # (9*3*Cout, n), K axis
    out = jnp.dot(w2_ref[...], patches,
                  preferred_element_type=jnp.float32) + cb2_ref[...]
    o_ref[...] = out.astype(o_ref.dtype)             # lane-dense (3*Cout, n) store


def mmff_block(x_nchw_1, x_nchw_2, x_nchw_3, params):
    """x_*: (B, Cin, H, W) float32. Returns (B, 3*Cout, H-2, W-2)."""
    B, Cin, H, W = x_nchw_1.shape
    Cout = params["w1"].shape[-1]
    Ho, Wo = H - 2, W - 2
    n = B * H * W
    C1, C2 = 3 * Cin, 3 * Cout

    # ---- wrapper-side layout plumbing: channels -> sublanes, n -> lanes ----
    x_all = jnp.concatenate(
        [jnp.transpose(x, (1, 0, 2, 3)).reshape(Cin, n)
         for x in (x_nchw_1, x_nchw_2, x_nchw_3)],
        axis=0).astype(jnp.float32)                              # (3*Cin, n)

    eye3 = jnp.eye(3, dtype=jnp.float32)
    g1 = params["g1"].reshape(C1, 1)
    b1 = params["b1"].reshape(C1, 1)
    # block-diagonal 1x1 weight: rows (branch, out), cols (branch, in)
    w1_bd = jnp.einsum("kl,kio->koli", eye3, params["w1"]).reshape(C2, C1)
    cb1 = params["cb1"].reshape(C2, 1)
    g2 = params["g2"].reshape(C2, 1)
    b2 = params["b2"].reshape(C2, 1)
    # block 3x3 weight: rows (branch, out), cols (tap, branch, in)
    w2_bd = jnp.einsum("kl,ktio->kotli", eye3, params["w2"]).reshape(C2, 9 * C2)
    cb2 = params["cb2"].reshape(C2, 1)

    out_flat = pl.pallas_call(
        functools.partial(mmff_kernel, W=W),
        out_shape=jax.ShapeDtypeStruct((C2, n), jnp.float32),
    )(x_all, g1, b1, w1_bd, cb1, g2, b2, w2_bd, cb2)

    # crop the VALID region and return to NCHW (branch-major channels, matching
    # torch.cat(dim=1)).
    out = out_flat.reshape(C2, B, H, W)[:, :, :Ho, :Wo]
    return jnp.transpose(out, (1, 0, 2, 3))


# ----------------------- pure-JAX reference (for checking) -----------------------
def _ref_branch(x_nhwc, g1, b1, w1, cb1, g2, b2, w2, cb2):
    mean1 = x_nhwc.mean(axis=(0, 1, 2), keepdims=True)
    var1 = x_nhwc.var(axis=(0, 1, 2), keepdims=True)  # biased, like BN train mode
    xn = (x_nhwc - mean1) / jnp.sqrt(var1 + EPS) * g1 + b1
    y = jnp.einsum("bhwc,cd->bhwd", xn, w1) + cb1
    mean2 = y.mean(axis=(0, 1, 2), keepdims=True)
    var2 = y.var(axis=(0, 1, 2), keepdims=True)
    yn = (y - mean2) / jnp.sqrt(var2 + EPS) * g2 + b2
    cout = w1.shape[-1]
    out = lax.conv_general_dilated(
        yn, w2.reshape(3, 3, cout, cout), window_strides=(1, 1), padding="VALID",
        dimension_numbers=("NHWC", "HWIO", "NHWC")) + cb2
    return out  # NHWC


def mmff_block_reference(x1, x2, x3, params):
    outs = []
    for k, x in enumerate((x1, x2, x3)):
        x_nhwc = jnp.transpose(x, (0, 2, 3, 1))
        o = _ref_branch(x_nhwc,
                        params["g1"][k, 0], params["b1"][k, 0],
                        params["w1"][k], params["cb1"][k, 0],
                        params["g2"][k, 0], params["b2"][k, 0],
                        params["w2"][k], params["cb2"][k, 0])
        outs.append(jnp.transpose(o, (0, 3, 1, 2)))  # NCHW
    return jnp.concatenate(outs, axis=1)


# ----------------------------------- main -----------------------------------
if __name__ == "__main__":
    B, Cin, Cout, H, W = 2, 4, 8, 16, 16

    key = jax.random.PRNGKey(0)
    keys = jax.random.split(key, 12)

    # Inputs (PyTorch-style NCHW).
    x1 = jax.random.normal(keys[0], (B, Cin, H, W), jnp.float32)
    x2 = jax.random.normal(keys[1], (B, Cin, H, W), jnp.float32)
    x3 = jax.random.normal(keys[2], (B, Cin, H, W), jnp.float32)

    # Deterministic parameters, stacked over the 3 branches.
    params = {
        "g1":  1.0 + 0.1 * jax.random.normal(keys[3], (3, 1, Cin), jnp.float32),
        "b1":  0.1 * jax.random.normal(keys[4], (3, 1, Cin), jnp.float32),
        "w1":  0.2 * jax.random.normal(keys[5], (3, Cin, Cout), jnp.float32),
        "cb1": 0.1 * jax.random.normal(keys[6], (3, 1, Cout), jnp.float32),
        "g2":  1.0 + 0.1 * jax.random.normal(keys[7], (3, 1, Cout), jnp.float32),
        "b2":  0.1 * jax.random.normal(keys[8], (3, 1, Cout), jnp.float32),
        "w2":  0.1 * jax.random.normal(keys[9], (3, 9, Cout, Cout), jnp.float32),
        "cb2": 0.1 * jax.random.normal(keys[10], (3, 1, Cout), jnp.float32),
    }

    out = jax.block_until_ready(mmff_block(x1, x2, x3, params))
    ref = jax.block_until_ready(mmff_block_reference(x1, x2, x3, params))

    assert out.shape == (B, 3 * Cout, H - 2, W - 2), out.shape
    assert jnp.allclose(out, ref, rtol=1e-4, atol=1e-4), float(
        jnp.max(jnp.abs(out - ref)))

    print("KERNEL_OK")
</pallas_src>

<mosaic_0001>
module attributes {stable_mosaic.version = 11 : i64} {
  func.func @mmff_kernel(%arg0: memref<12x512xf32, #tpu.memory_space<vmem>>, %arg1: memref<12x1xf32, #tpu.memory_space<vmem>>, %arg2: memref<12x1xf32, #tpu.memory_space<vmem>>, %arg3: memref<24x12xf32, #tpu.memory_space<vmem>>, %arg4: memref<24x1xf32, #tpu.memory_space<vmem>>, %arg5: memref<24x1xf32, #tpu.memory_space<vmem>>, %arg6: memref<24x1xf32, #tpu.memory_space<vmem>>, %arg7: memref<24x216xf32, #tpu.memory_space<vmem>>, %arg8: memref<24x1xf32, #tpu.memory_space<vmem>>, %arg9: memref<24x512xf32, #tpu.memory_space<vmem>>) attributes {dimension_semantics = [], scalar_prefetch = 0 : i64, scratch_operands = 0 : i64, tpu.core_type = #tpu.core_type<tc>} {
    %c0 = arith.constant 0 : index
    %c0_0 = arith.constant 0 : index
    %0 = vector.load %arg0[%c0, %c0_0] : memref<12x512xf32, #tpu.memory_space<vmem>>, vector<12x512xf32>
    %cst = arith.constant dense<0.000000e+00> : vector<12xf32>
    %1 = vector.multi_reduction <add>, %0, %cst [1] : vector<12x512xf32> to vector<12xf32>
    %2 = vector.shape_cast %1 : vector<12xf32> to vector<12x1xf32>
    %cst_1 = arith.constant 0.001953125 : f32
    %3 = vector.broadcast %cst_1 : f32 to vector<12x1xf32>
    %4 = arith.mulf %2, %3 : vector<12x1xf32>
    %5 = arith.mulf %0, %0 : vector<12x512xf32>
    %cst_2 = arith.constant dense<0.000000e+00> : vector<12xf32>
    %6 = vector.multi_reduction <add>, %5, %cst_2 [1] : vector<12x512xf32> to vector<12xf32>
    %7 = vector.shape_cast %6 : vector<12xf32> to vector<12x1xf32>
    %cst_3 = arith.constant 0.001953125 : f32
    %8 = vector.broadcast %cst_3 : f32 to vector<12x1xf32>
    %9 = arith.mulf %7, %8 : vector<12x1xf32>
    %10 = arith.mulf %4, %4 : vector<12x1xf32>
    %11 = arith.subf %9, %10 : vector<12x1xf32>
    %cst_4 = arith.constant 0.000000e+00 : f32
    %12 = vector.broadcast %cst_4 : f32 to vector<12x1xf32>
    %13 = arith.maximumf %11, %12 : vector<12x1xf32>
    %14 = vector.broadcast %4 : vector<12x1xf32> to vector<12x512xf32>
    %15 = arith.subf %0, %14 : vector<12x512xf32>
    %cst_5 = arith.constant 9.99999974E-6 : f32
    %16 = vector.broadcast %cst_5 : f32 to vector<12x1xf32>
    %17 = arith.addf %13, %16 : vector<12x1xf32>
    %18 = math.rsqrt %17 : vector<12x1xf32>
    %c0_6 = arith.constant 0 : index
    %c0_7 = arith.constant 0 : index
    %19 = vector.load %arg1[%c0_6, %c0_7] : memref<12x1xf32, #tpu.memory_space<vmem>>, vector<12x1xf32>
    %20 = arith.mulf %18, %19 : vector<12x1xf32>
    %21 = vector.broadcast %20 : vector<12x1xf32> to vector<12x512xf32>
    %22 = arith.mulf %15, %21 : vector<12x512xf32>
    %c0_8 = arith.constant 0 : index
    %c0_9 = arith.constant 0 : index
    %23 = vector.load %arg2[%c0_8, %c0_9] : memref<12x1xf32, #tpu.memory_space<vmem>>, vector<12x1xf32>
    %24 = vector.broadcast %23 : vector<12x1xf32> to vector<12x512xf32>
    %25 = arith.addf %22, %24 : vector<12x512xf32>
    %c0_10 = arith.constant 0 : index
    %c0_11 = arith.constant 0 : index
    %26 = vector.load %arg3[%c0_10, %c0_11] : memref<24x12xf32, #tpu.memory_space<vmem>>, vector<24x12xf32>
    %cst_12 = arith.constant dense<0.000000e+00> : vector<24x512xf32>
    %27 = tpu.matmul %26, %25, %cst_12 {dimension_numbers = #tpu.dot_dimension_numbers<[1], [0], [0], [1], [0, 0, 1, 1], [], []>} : vector<24x12xf32>, vector<12x512xf32>, vector<24x512xf32> -> vector<24x512xf32>
    %c0_13 = arith.constant 0 : index
    %c0_14 = arith.constant 0 : index
    %28 = vector.load %arg4[%c0_13, %c0_14] : memref<24x1xf32, #tpu.memory_space<vmem>>, vector<24x1xf32>
    %29 = vector.broadcast %28 : vector<24x1xf32> to vector<24x512xf32>
    %30 = arith.addf %27, %29 : vector<24x512xf32>
    %cst_15 = arith.constant dense<0.000000e+00> : vector<24xf32>
    %31 = vector.multi_reduction <add>, %30, %cst_15 [1] : vector<24x512xf32> to vector<24xf32>
    %32 = vector.shape_cast %31 : vector<24xf32> to vector<24x1xf32>
    %cst_16 = arith.constant 0.001953125 : f32
    %33 = vector.broadcast %cst_16 : f32 to vector<24x1xf32>
    %34 = arith.mulf %32, %33 : vector<24x1xf32>
    %35 = arith.mulf %30, %30 : vector<24x512xf32>
    %cst_17 = arith.constant dense<0.000000e+00> : vector<24xf32>
    %36 = vector.multi_reduction <add>, %35, %cst_17 [1] : vector<24x512xf32> to vector<24xf32>
    %37 = vector.shape_cast %36 : vector<24xf32> to vector<24x1xf32>
    %cst_18 = arith.constant 0.001953125 : f32
    %38 = vector.broadcast %cst_18 : f32 to vector<24x1xf32>
    %39 = arith.mulf %37, %38 : vector<24x1xf32>
    %40 = arith.mulf %34, %34 : vector<24x1xf32>
    %41 = arith.subf %39, %40 : vector<24x1xf32>
    %cst_19 = arith.constant 0.000000e+00 : f32
    %42 = vector.broadcast %cst_19 : f32 to vector<24x1xf32>
    %43 = arith.maximumf %41, %42 : vector<24x1xf32>
    %44 = vector.broadcast %34 : vector<24x1xf32> to vector<24x512xf32>
    %45 = arith.subf %30, %44 : vector<24x512xf32>
    %cst_20 = arith.constant 9.99999974E-6 : f32
    %46 = vector.broadcast %cst_20 : f32 to vector<24x1xf32>
    %47 = arith.addf %43, %46 : vector<24x1xf32>
    %48 = math.rsqrt %47 : vector<24x1xf32>
    %c0_21 = arith.constant 0 : index
    %c0_22 = arith.constant 0 : index
    %49 = vector.load %arg5[%c0_21, %c0_22] : memref<24x1xf32, #tpu.memory_space<vmem>>, vector<24x1xf32>
    %50 = arith.mulf %48, %49 : vector<24x1xf32>
    %51 = vector.broadcast %50 : vector<24x1xf32> to vector<24x512xf32>
    %52 = arith.mulf %45, %51 : vector<24x512xf32>
    %c0_23 = arith.constant 0 : index
    %c0_24 = arith.constant 0 : index
    %53 = vector.load %arg6[%c0_23, %c0_24] : memref<24x1xf32, #tpu.memory_space<vmem>>, vector<24x1xf32>
    %54 = vector.broadcast %53 : vector<24x1xf32> to vector<24x512xf32>
    %55 = arith.addf %52, %54 : vector<24x512xf32>
    %c511_i32 = arith.constant 511 : i32
    %56 = tpu.dynamic_rotate %55 by %c511_i32 dim 1 : vector<24x512xf32>, i32 -> vector<24x512xf32>
    %c510_i32 = arith.constant 510 : i32
    %57 = tpu.dynamic_rotate %55 by %c510_i32 dim 1 : vector<24x512xf32>, i32 -> vector<24x512xf32>
    %c496_i32 = arith.constant 496 : i32
    %58 = tpu.dynamic_rotate %55 by %c496_i32 dim 1 : vector<24x512xf32>, i32 -> vector<24x512xf32>
    %c495_i32 = arith.constant 495 : i32
    %59 = tpu.dynamic_rotate %55 by %c495_i32 dim 1 : vector<24x512xf32>, i32 -> vector<24x512xf32>
    %c494_i32 = arith.constant 494 : i32
    %60 = tpu.dynamic_rotate %55 by %c494_i32 dim 1 : vector<24x512xf32>, i32 -> vector<24x512xf32>
    %c480_i32 = arith.constant 480 : i32
    %61 = tpu.dynamic_rotate %55 by %c480_i32 dim 1 : vector<24x512xf32>, i32 -> vector<24x512xf32>
    %c479_i32 = arith.constant 479 : i32
    %62 = tpu.dynamic_rotate %55 by %c479_i32 dim 1 : vector<24x512xf32>, i32 -> vector<24x512xf32>
    %c478_i32 = arith.constant 478 : i32
    %63 = tpu.dynamic_rotate %55 by %c478_i32 dim 1 : vector<24x512xf32>, i32 -> vector<24x512xf32>
    %64 = tpu.concatenate %55, %56, %57, %58, %59, %60, %61, %62, %63 in 0 : vector<24x512xf32>, vector<24x512xf32>, vector<24x512xf32>, vector<24x512xf32>, vector<24x512xf32>, vector<24x512xf32>, vector<24x512xf32>, vector<24x512xf32>, vector<24x512xf32> -> vector<216x512xf32>
    %c0_25 = arith.constant 0 : index
    %c0_26 = arith.constant 0 : index
    %65 = vector.load %arg7[%c0_25, %c0_26] : memref<24x216xf32, #tpu.memory_space<vmem>>, vector<24x216xf32>
    %cst_27 = arith.constant dense<0.000000e+00> : vector<24x512xf32>
    %66 = tpu.matmul %65, %64, %cst_27 {dimension_numbers = #tpu.dot_dimension_numbers<[1], [0], [0], [1], [0, 0, 1, 1], [], []>} : vector<24x216xf32>, vector<216x512xf32>, vector<24x512xf32> -> vector<24x512xf32>
    %c0_28 = arith.constant 0 : index
    %c0_29 = arith.constant 0 : index
    %67 = vector.load %arg8[%c0_28, %c0_29] : memref<24x1xf32, #tpu.memory_space<vmem>>, vector<24x1xf32>
    %68 = vector.broadcast %67 : vector<24x1xf32> to vector<24x512xf32>
    %69 = arith.addf %66, %68 : vector<24x512xf32>
    %c0_30 = arith.constant 0 : index
    %c0_31 = arith.constant 0 : index
    %70 = vector.load %arg9[%c0_30, %c0_31] : memref<24x512xf32, #tpu.memory_space<vmem>>, vector<24x512xf32>
    tpu.vector_store %arg9[%c0_30, %c0_31], %69 {strides = array<i32>} : memref<24x512xf32, #tpu.memory_space<vmem>>, vector<24x512xf32>,
    return
  }
}

</mosaic_0001>

<bundles_post_ra>
// kernel: tpu_custom_call.1
= control target key start
LH: loop header
LB: loop body
LE: loop exit
PB: predicated region body
PF: predicated region fallthrough
CT: control target
= control target key end

     0   :  { %vm46_vm0 = vcmask 1043456   ;;  %s2191_s0 = inlined_call_operand.vmem [shape: f32[12,512], index: 0, kind: input, shape index: {}]   ;;  %s2192_s1 = inlined_call_operand.vmem [shape: f32[12,1], index: 1, kind: input, shape index: {}]   ;;  %s2193_s2 = inlined_call_operand.vmem [shape: f32[12,1], index: 2, kind: input, shape index: {}]   ;;  %s2194_s3 = inlined_call_operand.vmem [shape: f32[24,12], index: 3, kind: input, shape index: {}]   ;;  %s2195_s4 = inlined_call_operand.vmem [shape: f32[24,1], index: 4, kind: input, shape index: {}]   ;;  %s2196_s5 = inlined_call_operand.vmem [shape: f32[24,1], index: 5, kind: input, shape index: {}]   ;;  %s2197_s6 = inlined_call_operand.vmem [shape: f32[24,1], index: 6, kind: input, shape index: {}]   ;;  %s2198_s7 = inlined_call_operand.vmem [shape: f32[24,216], index: 7, kind: input, shape index: {}]   ;;  %s2199_s8 = inlined_call_operand.vmem [shape: f32[24,1], index: 8, kind: input, shape index: {}]   ;;  %s2200_s9 = inlined_call_operand.hbm [shape: f32[24,512], index: 9, kind: output, shape index: {}]  }
   0x1   :  { %v1494_v0 = vld [vmem:[%s2191_s0] sm:$0xff]  ;;  %v1499_v1 = vld [vmem:[%s2191_s0 + $0x8] sm:$0xff]  ;;  %v1504_v2 = vld [vmem:[%s2191_s0 + $0x10] sm:$0xff] }
   0x2   :  { %v1509_v3 = vld [vmem:[%s2191_s0 + $0x18] sm:$0xff]  ;;  %v41_v4 = vadd.f32 %v1499_v1, %v1494_v0  ;;  %v58_v5 = vmul.f32 %v1494_v0, %v1494_v0  ;;  %v59_v6 = vmul.f32 %v1499_v1, %v1499_v1  ;;  %v60_v7 = vmul.f32 %v1504_v2, %v1504_v2  ;;  %v1522_v8 = vld [vmem:[%s2191_s0 + $0x20] sm:$0xf]  ;;  %v1527_v9 = vld [vmem:[%s2191_s0 + $0x28] sm:$0xf] }
   0x3   :  { %v61_v10 = vmul.f32 %v1509_v3, %v1509_v3  ;;  %v1534_v11 = vld [vmem:[%s2191_s0 + $0x30] sm:$0xf]  ;;  %v1539_v12 = vld [vmem:[%s2191_s0 + $0x38] sm:$0xf]  ;;  %v47_v13 = vsel %vm46_vm0, %v1522_v8, 0.0  ;;  %v48_v14 = vsel %vm46_vm0, %v1527_v9, 0.0  ;;  %v62_v15 = vmul.f32 %v1522_v8, %v1522_v8 }
   0x4   :  { %v42_v16 = vadd.f32 %v41_v4, %v1504_v2  ;;  %v66_v17 = vadd.f32 %v59_v6, %v58_v5  ;;  %v49_v18 = vadd.f32 %v48_v14, %v47_v13  ;;  %v50_v19 = vsel %vm46_vm0, %v1534_v11, 0.0 }
   0x5   :  { %14 = vsyncpa [#allocation3], 0  ;;  %v52_v20 = vsel %vm46_vm0, %v1539_v12, 0.0  ;;  %v63_v21 = vmul.f32 %v1527_v9, %v1527_v9  ;;  %v64_v22 = vmul.f32 %v1534_v11, %v1534_v11  ;;  %v65_v23 = vmul.f32 %v1539_v12, %v1539_v12  ;;  %v122_v36 = vld [vmem:[%s2193_s2] sm:$0xff]  ;;  %v101_v57 = vld [vmem:[%s2192_s1 + $0x8] sm:$0xf] }
   0x6   :  { %v43_v24 = vadd.f32 %v42_v16, %v1509_v3  ;;  %v67_v25 = vadd.f32 %v66_v17, %v60_v7  ;;  %v51_v26 = vadd.f32 %v50_v19, %v49_v18  ;;  %v71_v27 = vsel %vm46_vm0, %v62_v15, 0.0  ;;  %v100_v54 = vld [vmem:[%s2192_s1] sm:$0xff]  ;;  %v123_v60 = vld [vmem:[%s2193_s2 + $0x8] sm:$0xf]  ;;  %v147_v4 = vld [vmem:[%s2195_s4 + $0x10] sm:$0xff]  ;;  %s1432_s30 = smov 110  }
   0x7   :  { %v72_v28 = vsel %vm46_vm0, %v63_v21, 0.0  ;;  %v74_v29 = vsel %vm46_vm0, %v64_v22, 0.0  ;;  %v76_v33 = vsel %vm46_vm0, %v65_v23, 0.0  ;;  %v1427_v37 = vmov 0   ;;  %v145_v61 = vld [vmem:[%s2195_s4] sm:$0xff]  ;;  %v146_v62 = vld [vmem:[%s2195_s4 + $0x8] sm:$0xff] }
   0x8   :  { %44 = vadd.xlane.f32.xlu0 %v43_v24  ;;  %v68_v30 = vadd.f32 %v67_v25, %v61_v10  ;;  %v53_v31 = vadd.f32 %v52_v20, %v51_v26  ;;  %v73_v32 = vadd.f32 %v72_v28, %v71_v27  ;;  %1162 = vset.pattern.permute.xlu1 %v1427_v37  ;;  %v1428_v63 = vmov 0.0   ;;  %s1433_s10 = smov 95   ;;  %s1434_s11 = smov 126  }
   0x9   :  { %1161 = vset.pattern.permute.xlu0 %v1427_v37  ;;  %249 = vmatprep.mubr.f32.mxu0 %v1428_v63  ;;  %vm1429_vm1 = vmmov 1   ;;  %vm163_vm3 = vcmask 97280   ;;  %s1435_s12 = smov 111   ;;  %s1436_s13 = smov 96   ;;  %vm811_vm4 = vcmask 719872  }
   0xa   :  { %69 = vadd.xlane.f32.xlu1 %v68_v30  ;;  %v75_v34 = vadd.f32 %v74_v29, %v73_v32  ;;  %332 = vmatprep.mubr.f32.mxu1 %v1428_v63  ;;  %vm1032_vm2 = vmpackc.low %vm46_vm0, %vm1429_vm1  ;;  %s1437_s14 = smov 94  }
   0xc   :  { %54 = vadd.xlane.f32.xlu0 %v53_v31  ;;  %v77_v35 = vadd.f32 %v76_v33, %v75_v34  ;;  %v142_v33 = vld [vmem:[%s2194_s3] sm:$0xff]  ;;  %v143_v34 = vld [vmem:[%s2194_s3 + $0x8] sm:$0xff] }
   0xe   :  { %78 = vadd.xlane.f32.xlu1 %v77_v35  ;;  %v144_v35 = vld [vmem:[%s2194_s3 + $0x10] sm:$0xff] }
  0x1f   :  { %126 = vperm.xlu1 %1162, %v122_v36  }
  0x95   :  { %v45_v38 = vpop.xlane.xlu0 %44 }
  0x96   :  { %v56_v39 = vmul.f32 0.001953125, %v45_v38 }
  0x97   :  { %v70_v40 = vpop.xlane.xlu1 %69 }
  0x98   :  { %v80_v41 = vmul.f32 0.001953125, %v70_v40  ;;  %v82_v42 = vmul.f32 %v56_v39, %v56_v39  ;;  %v88_v7 = vsub.f32 %v1494_v0, %v56_v39  ;;  %v90_v10 = vsub.f32 %v1504_v2, %v56_v39 }
  0x99   :  { %v55_v43 = vpop.xlane.xlu0 %54  ;;  %v89_v13 = vsub.f32 %v1499_v1, %v56_v39  ;;  %v91_v14 = vsub.f32 %v1509_v3, %v56_v39 }
  0x9a   :  { %v84_v44 = vsub.f32 %v80_v41, %v82_v42  ;;  %v57_v45 = vmul.f32 0.001953125, %v55_v43 }
  0x9b   :  { %v79_v46 = vpop.xlane.xlu1 %78 }
  0x9c   :  { %v86_v47 = vmax.f32 %v84_v44, 0.0  ;;  %v81_v48 = vmul.f32 0.001953125, %v79_v46  ;;  %v83_v49 = vmul.f32 %v57_v45, %v57_v45  ;;  %v92_v20 = vsub.f32 %v1522_v8, %v57_v45 }
  0x9d   :  { %v94_v21 = vsub.f32 %v1534_v11, %v57_v45  ;;  %v93_v22 = vsub.f32 %v1527_v9, %v57_v45  ;;  %v95_v23 = vsub.f32 %v1539_v12, %v57_v45 }
  0x9e   :  { %v96_v50 = vadd.f32 1e-05, %v86_v47  ;;  %v85_v51 = vsub.f32 %v81_v48, %v83_v49 }
  0x9f   :  { %v127_v5 = vpop.permute.xlu1 %126 }
  0xa0   :  { %1393 = vrsqrt.f32 %v96_v50  ;;  %v87_v52 = vmax.f32 %v85_v51, 0.0 }
  0xa2   :  { %v97_v53 = vadd.f32 1e-05, %v87_v52 }
  0xa4   :  { %1395 = vrsqrt.f32 %v97_v53 }
  0xaa   :  { %v1394_v55 = vpop.eup %1393 }
  0xab   :  { %v102_v56 = vmul.f32 %v1394_v55, %v100_v54 }
  0xad   :  { %106 = vperm.xlu0 %1161, %v102_v56  }
  0xae   :  { %v1396_v58 = vpop.eup %1395 }
  0xaf   :  { %v103_v59 = vmul.f32 %v1396_v58, %v101_v57 }
  0xb1   :  { %111 = vperm.xlu1 %1162, %v103_v59  }
  0xb5   :  { %131 = vperm.xlu1 %1162, %v123_v60  }
  0xb9   :  { %150 = vperm.xlu1 %1162, %v145_v61  }
  0xbd   :  { %155 = vperm.xlu1 %1162, %v146_v62  }
  0xc1   :  { %160 = vperm.xlu1 %1162, %v147_v4  }
 0x12c   :  { %v107_v6 = vpop.permute.xlu0 %106 }
 0x12d   :  { %v114_v15 = vmul.f32 %v107_v6, %v88_v7  ;;  %v116_v16 = vmul.f32 %v107_v6, %v90_v10  ;;  %v115_v18 = vmul.f32 %v107_v6, %v89_v13  ;;  %v117_v19 = vmul.f32 %v107_v6, %v91_v14 }
 0x12f   :  { %v135_v26 = vadd.f32 %v127_v5, %v115_v18  ;;  %v137_v3 = vadd.f32 %v127_v5, %v117_v19  ;;  %v134_v27 = vadd.f32 %v127_v5, %v114_v15  ;;  %v136_v28 = vadd.f32 %v127_v5, %v116_v16 }
 0x130   :  { %v112_v17 = vpop.permute.xlu1 %111 }
 0x131   :  { %v118_v0 = vmul.f32 %v112_v17, %v92_v20  ;;  %v120_v24 = vmul.f32 %v112_v17, %v94_v21  ;;  %v119_v2 = vmul.f32 %v112_v17, %v93_v22  ;;  %v121_v25 = vmul.f32 %v112_v17, %v95_v23 }
 0x134   :  { %v132_v1 = vpop.permute.xlu1 %131 }
 0x135   :  { %v138_v29 = vadd.f32 %v132_v1, %v118_v0  ;;  %v140_v30 = vadd.f32 %v132_v1, %v120_v24  ;;  %v139_v31 = vadd.f32 %v132_v1, %v119_v2  ;;  %v141_v32 = vadd.f32 %v132_v1, %v121_v25 }
 0x137   :  { %v1031_v8 = vpack.c.bf16 %v139_v31, %v135_v26  ;;  %v1037_v9 = vpack.c.bf16 %v141_v32, %v137_v3  ;;  %v1034_v11 = vpack.c.bf16 %v138_v29, %v134_v27  ;;  %v1040_v12 = vpack.c.bf16 %v140_v30, %v136_v28 }
 0x138   :  { %v151_v36 = vpop.permute.xlu1 %150 }
 0x139   :  { %1033 = vmatprep.subr.msk.bf16.mxu0 %vm1032_vm2, %v1031_v8  ;;  %1039 = vmatprep.subr.msk.bf16.mxu1 %vm1032_vm2, %v1037_v9  ;;  %v459_v8 = vld [vmem:[%s2197_s6] sm:$0xff]  ;;  %v460_v9 = vld [vmem:[%s2197_s6 + $0x8] sm:$0xff] }
 0x13a   :  { %1036 = vmatpush1.bf16.msk.msra.mxu0 %vm1032_vm2, %v1034_v11  ;;  %1042 = vmatpush1.bf16.msk.msra.mxu1 %vm1032_vm2, %v1040_v12 }
 0x13c   :  { %v156_v37 = vpop.permute.xlu1 %155 }
 0x13d   :  { %1017 = vmatmul.mubr.msk.f32.vlgmr.msra.gmra.mrb[0].mxu0 %vm163_vm3, %v142_v33  ;;  %1022 = vmatmul.mubr.msk.f32.vlgmr.msra.gmra.mrb[0].mxu1 %vm163_vm3, %v142_v33 }
 0x13e   :  { %255 = vmatprep.mubr.f32.mxu0 %v1428_v63  ;;  %338 = vmatprep.mubr.f32.mxu1 %v1428_v63 }
 0x140   :  { %v161_v58 = vpop.permute.xlu1 %160 }
 0x141   :  { %1018 = vmatmul.mubr.msk.f32.gmra.mrb[2].mxu0 %vm163_vm3, %v143_v34  ;;  %1023 = vmatmul.mubr.msk.f32.gmra.mrb[2].mxu1 %vm163_vm3, %v143_v34 }
 0x142   :  { %261 = vmatprep.mubr.f32.mxu0 %v1428_v63  ;;  %344 = vmatprep.mubr.f32.mxu1 %v1428_v63 }
 0x145   :  { %1019 = vmatmul.mubr.msk.f32.gmra.mrb[4].mxu0 %vm163_vm3, %v144_v35  ;;  %1024 = vmatmul.mubr.msk.f32.gmra.mrb[4].mxu1 %vm163_vm3, %v144_v35 }
 0x210   :  { %v251_v38 = vpop.f32.mrb[0].mxu0  ;;  %v334_v39 = vpop.f32.mrb[0].mxu1 }
 0x211   :  { %v1602_v40 = vadd.f32 %v251_v38, %v151_v36  ;;  %v253_v41 = vpop.f32.mrb[1].mxu0  ;;  %v336_v42 = vpop.f32.mrb[1].mxu1  ;;  %v1604_v43 = vadd.f32 %v334_v39, %v151_v36 }
 0x212   :  { %v1606_v44 = vadd.f32 %v253_v41, %v151_v36  ;;  %v1610_v46 = vadd.f32 %v336_v42, %v151_v36 }
 0x213   :  { %v369_v45 = vmul.f32 %v1602_v40, %v1602_v40  ;;  %v371_v54 = vmul.f32 %v1604_v43, %v1604_v43 }
 0x214   :  { %v351_v47 = vadd.f32 %v1606_v44, %v1602_v40  ;;  %v370_v48 = vmul.f32 %v1606_v44, %v1606_v44  ;;  %v257_v49 = vpop.f32.mrb[2].mxu0  ;;  %v340_v50 = vpop.f32.mrb[2].mxu1  ;;  %v372_v61 = vmul.f32 %v1610_v46, %v1610_v46 }
 0x215   :  { %v1616_v51 = vadd.f32 %v257_v49, %v156_v37  ;;  %v259_v52 = vpop.f32.mrb[3].mxu0  ;;  %v342_v53 = vpop.f32.mrb[3].mxu1  ;;  %v1625_v60 = vadd.f32 %v340_v50, %v156_v37 }
 0x216   :  { %v1620_v55 = vadd.f32 %v259_v52, %v156_v37  ;;  %v352_v56 = vadd.f32 %v351_v47, %v1604_v43  ;;  %v381_v57 = vadd.f32 %v370_v48, %v369_v45  ;;  %v1634_v10 = vadd.f32 %v342_v53, %v156_v37 }
 0x217   :  { %v373_v59 = vmul.f32 %v1616_v51, %v1616_v51  ;;  %v375_v20 = vmul.f32 %v1625_v60, %v1625_v60 }
 0x218   :  { %v356_v62 = vadd.f32 %v1620_v55, %v1616_v51  ;;  %v374_v63 = vmul.f32 %v1620_v55, %v1620_v55  ;;  %v263_v4 = vpop.f32.mrb[4].mxu0  ;;  %v346_v5 = vpop.f32.mrb[4].mxu1  ;;  %v353_v6 = vadd.f32 %v352_v56, %v1610_v46  ;;  %v382_v7 = vadd.f32 %v381_v57, %v371_v54 }
 0x219   :  { %v1636_v13 = vadd.f32 %v263_v4, %v161_v58  ;;  %v265_v14 = vpop.f32.mrb[5].mxu0  ;;  %v348_v15 = vpop.f32.mrb[5].mxu1  ;;  %v1638_v16 = vadd.f32 %v346_v5, %v161_v58  ;;  %v376_v2 = vmul.f32 %v1634_v10, %v1634_v10  ;;  %v427_v5 = vld [vmem:[%s2196_s5 + $0x8] sm:$0xff] }
 0x21a   :  { %v1640_v17 = vadd.f32 %v265_v14, %v161_v58  ;;  %354 = vadd.xlane.f32.xlu1 %v353_v6  ;;  %v383_v18 = vadd.f32 %v382_v7, %v372_v61  ;;  %v357_v19 = vadd.f32 %v356_v62, %v1625_v60  ;;  %v386_v22 = vadd.f32 %v374_v63, %v373_v59  ;;  %v426_v62 = vld [vmem:[%s2196_s5] sm:$0xff]  ;;  %v428_v14 = vld [vmem:[%s2196_s5 + $0x10] sm:$0xff]  ;;  %s1430_s5 = smov 127  }
 0x21b   :  { %v377_v21 = vmul.f32 %v1636_v13, %v1636_v13  ;;  %v379_v1 = vmul.f32 %v1638_v16, %v1638_v16  ;;  %v1656_v26 = vadd.f32 %v348_v15, %v161_v58 }
 0x21c   :  { %v361_v23 = vadd.f32 %v1640_v17, %v1636_v13  ;;  %v378_v0 = vmul.f32 %v1640_v17, %v1640_v17  ;;  %384 = vadd.xlane.f32.xlu0 %v383_v18  ;;  %v358_v24 = vadd.f32 %v357_v19, %v1634_v10  ;;  %v387_v25 = vadd.f32 %v386_v22, %v375_v20  ;;  %v461_v19 = vld [vmem:[%s2197_s6 + $0x10] sm:$0xff]  ;;  %s1431_s6 = smov 112  }
 0x21d   :  { %v380_v31 = vmul.f32 %v1656_v26, %v1656_v26 }
 0x21e   :  { %359 = vadd.xlane.f32.xlu1 %v358_v24  ;;  %v362_v3 = vadd.f32 %v361_v23, %v1638_v16  ;;  %v391_v27 = vadd.f32 %v378_v0, %v377_v21  ;;  %v388_v29 = vadd.f32 %v387_v25, %v376_v2 }
 0x220   :  { %v363_v28 = vadd.f32 %v362_v3, %v1656_v26  ;;  %v392_v30 = vadd.f32 %v391_v27, %v379_v1 }
 0x222   :  { %364 = vadd.xlane.f32.xlu0 %v363_v28  ;;  %389 = vadd.xlane.f32.xlu1 %v388_v29  ;;  %v393_v32 = vadd.f32 %v392_v30, %v380_v31 }
 0x226   :  { %394 = vadd.xlane.f32.xlu0 %v393_v32 }
 0x23c   :  { %464 = vperm.xlu0 %1161, %v459_v8  }
 0x240   :  { %469 = vperm.xlu0 %1161, %v460_v9  }
 0x2a7   :  { %v355_v11 = vpop.xlane.xlu1 %354 }
 0x2a8   :  { %v366_v12 = vmul.f32 0.001953125, %v355_v11 }
 0x2a9   :  { %v385_v33 = vpop.xlane.xlu0 %384 }
 0x2aa   :  { %v396_v34 = vmul.f32 0.001953125, %v385_v33  ;;  %v399_v35 = vmul.f32 %v366_v12, %v366_v12  ;;  %v408_v20 = vsub.f32 %v1602_v40, %v366_v12  ;;  %v409_v21 = vsub.f32 %v1606_v44, %v366_v12 }
 0x2ab   :  { %v360_v36 = vpop.xlane.xlu1 %359  ;;  %v410_v22 = vsub.f32 %v1604_v43, %v366_v12  ;;  %v411_v23 = vsub.f32 %v1610_v46, %v366_v12 }
 0x2ac   :  { %v402_v37 = vsub.f32 %v396_v34, %v399_v35  ;;  %v367_v38 = vmul.f32 0.001953125, %v360_v36 }
 0x2ae   :  { %v405_v39 = vmax.f32 %v402_v37, 0.0  ;;  %v400_v48 = vmul.f32 %v367_v38, %v367_v38  ;;  %v412_v31 = vsub.f32 %v1616_v51, %v367_v38  ;;  %v413_v40 = vsub.f32 %v1620_v55, %v367_v38 }
 0x2af   :  { %v365_v41 = vpop.xlane.xlu0 %364  ;;  %v390_v42 = vpop.xlane.xlu1 %389  ;;  %v414_v44 = vsub.f32 %v1625_v60, %v367_v38  ;;  %v415_v43 = vsub.f32 %v1634_v10, %v367_v38 }
 0x2b0   :  { %v420_v45 = vadd.f32 1e-05, %v405_v39  ;;  %v1668_v47 = vmul.f32 0.001953125, %v365_v41  ;;  %v397_v49 = vmul.f32 0.001953125, %v390_v42 }
 0x2b2   :  { %1397 = vrsqrt.f32 %v420_v45  ;;  %v403_v50 = vsub.f32 %v397_v49, %v400_v48  ;;  %v401_v54 = vmul.f32 %v1668_v47, %v1668_v47  ;;  %v416_v49 = vsub.f32 %v1636_v13, %v1668_v47 }
 0x2b3   :  { %v395_v52 = vpop.xlane.xlu0 %394 }
 0x2b4   :  { %v406_v53 = vmax.f32 %v403_v50, 0.0  ;;  %v398_v56 = vmul.f32 0.001953125, %v395_v52  ;;  %v417_v50 = vsub.f32 %v1640_v17, %v1668_v47 }
 0x2b6   :  { %v421_v57 = vadd.f32 1e-05, %v406_v53  ;;  %v404_v58 = vsub.f32 %v398_v56, %v401_v54  ;;  %v418_v56 = vsub.f32 %v1638_v16, %v1668_v47 }
 0x2b8   :  { %1399 = vrsqrt.f32 %v421_v57  ;;  %v407_v59 = vmax.f32 %v404_v58, 0.0  ;;  %v419_v57 = vsub.f32 %v1656_v26, %v1668_v47 }
 0x2ba   :  { %v422_v61 = vadd.f32 1e-05, %v407_v59 }
 0x2bb   :  { %v465_v3 = vpop.permute.xlu0 %464 }
 0x2bc   :  { %v1398_v63 = vpop.eup %1397  ;;  %1401 = vrsqrt.f32 %v422_v61 }
 0x2bd   :  { %v429_v4 = vmul.f32 %v1398_v63, %v426_v62 }
 0x2bf   :  { %434 = vperm.xlu1 %1162, %v429_v4   ;;  %v470_v34 = vpop.permute.xlu0 %469 }
 0x2c2   :  { %v1400_v6 = vpop.eup %1399 }
 0x2c3   :  { %v430_v7 = vmul.f32 %v1400_v6, %v427_v5  ;;  %v788_v6 = vld [vmem:[%s2198_s7 + $0x8] sm:$0xff] }
 0x2c4   :  { %1025 = vmatprep.mubr.msk.f32.mxu0 %vm811_vm4, %v788_v6  ;;  %1028 = vmatprep.mubr.msk.f32.mxu1 %vm811_vm4, %v788_v6 }
 0x2c5   :  { %439 = vperm.xlu1 %1162, %v430_v7   ;;  %v794_v7 = vld [vmem:[%s2199_s8 + $0x8] sm:$0xff] }
 0x2c6   :  { %v1402_v15 = vpop.eup %1401 }
 0x2c7   :  { %v431_v18 = vmul.f32 %v1402_v15, %v428_v14  ;;  %v793_v14 = vld [vmem:[%s2199_s8] sm:$0xff]  ;;  %v795_v15 = vld [vmem:[%s2199_s8 + $0x10] sm:$0xff] }
 0x2c9   :  { %444 = vperm.xlu1 %1162, %v431_v18   ;;  %v513_v18 = vlaneseq }
 0x2cd   :  { %474 = vperm.xlu1 %1162, %v461_v19   ;;  %v1796_v19 = vand.u32 127, %v513_v18 }
 0x2cf   :  { %vm515_vm5 = vcmp.lt.s32.totalorder %v1796_v19, 127  ;;  %vm737_vm6 = vcmp.lt.s32.totalorder %v1796_v19, 95  ;;  %vm589_vm7 = vcmp.lt.s32.totalorder %v1796_v19, 112  ;;  %vm663_vm8 = vcmp.lt.s32.totalorder %v1796_v19, 110 }
 0x2d0   :  { %vm552_vm9 = vcmp.lt.s32.totalorder %v1796_v19, 126  ;;  %vm626_vm10 = vcmp.lt.s32.totalorder %v1796_v19, 111  ;;  %vm700_vm11 = vcmp.lt.s32.totalorder %v1796_v19, 96  ;;  %vm774_vm12 = vcmp.lt.s32.totalorder %v1796_v19, 94  ;;  %v792_v19 = vld [vmem:[%s2198_s7 + $0x28] sm:$0xff] }
 0x33e   :  { %v435_v0 = vpop.permute.xlu1 %434 }
 0x33f   :  { %v447_v24 = vmul.f32 %v435_v0, %v408_v20  ;;  %v448_v2 = vmul.f32 %v435_v0, %v409_v21  ;;  %v449_v25 = vmul.f32 %v435_v0, %v410_v22  ;;  %v450_v1 = vmul.f32 %v435_v0, %v411_v23 }
 0x341   :  { %v477_v27 = vadd.f32 %v465_v3, %v447_v24  ;;  %v478_v28 = vadd.f32 %v465_v3, %v448_v2  ;;  %v479_v29 = vadd.f32 %v465_v3, %v449_v25  ;;  %v480_v30 = vadd.f32 %v465_v3, %v450_v1 }
 0x343   :  { %v1168_v32 = vpack.i.bf16 %v480_v30, %v479_v29  ;;  %v1163_v46 = vpack.i.bf16 %v478_v28, %v477_v27 }
 0x344   :  { %v440_v8 = vpop.permute.xlu1 %439 }
 0x345   :  { %v451_v9 = vmul.f32 %v440_v8, %v412_v31  ;;  %v452_v11 = vmul.f32 %v440_v8, %v413_v40  ;;  %v453_v12 = vmul.f32 %v440_v8, %v414_v44  ;;  %v454_v33 = vmul.f32 %v440_v8, %v415_v43  ;;  %1169 = vrot.lane.b32.xlu1 %v1168_v32, %s1430_s5 }
 0x346   :  { %1164 = vrot.lane.b32.xlu0 %v1163_v46, %s1430_s5 }
 0x347   :  { %v481_v51 = vadd.f32 %v470_v34, %v451_v9  ;;  %v482_v35 = vadd.f32 %v470_v34, %v452_v11  ;;  %v483_v55 = vadd.f32 %v470_v34, %v453_v12  ;;  %v484_v36 = vadd.f32 %v470_v34, %v454_v33 }
 0x348   :  { %v445_v48 = vpop.permute.xlu1 %444 }
 0x349   :  { %1179 = vrot.lane.b32.xlu1 %v1168_v32, %s1431_s6  ;;  %v1043_v60 = vpack.c.bf16 %v482_v35, %v478_v28  ;;  %v1095_v10 = vpack.c.bf16 %v484_v36, %v480_v30  ;;  %v1045_v37 = vpack.c.bf16 %v481_v51, %v477_v27  ;;  %v1097_v38 = vpack.c.bf16 %v483_v55, %v479_v29 }
 0x34a   :  { %1174 = vrot.lane.b32.xlu0 %v1163_v46, %s1431_s6  ;;  %v1208_v39 = vpack.i.bf16 %v482_v35, %v478_v28  ;;  %v1203_v41 = vpack.i.bf16 %v481_v51, %v477_v27  ;;  %v1696_v42 = vpack.i.bf16 %v484_v36, %v480_v30  ;;  %v1698_v45 = vpack.i.bf16 %v483_v55, %v479_v29 }
 0x34b   :  { %1044 = vmatprep.subr.bf16.mxu0 %v1043_v60  ;;  %1096 = vmatprep.subr.bf16.mxu1 %v1095_v10  ;;  %v455_v53 = vmul.f32 %v445_v48, %v416_v49  ;;  %v456_v54 = vmul.f32 %v445_v48, %v417_v50  ;;  %v457_v17 = vmul.f32 %v445_v48, %v418_v56 }
 0x34c   :  { %1046 = vmatpush1.bf16.msra.mxu0 %v1045_v37  ;;  %1098 = vmatpush1.bf16.msra.mxu1 %v1097_v38  ;;  %v475_v52 = vpop.permute.xlu1 %474  ;;  %v458_v59 = vmul.f32 %v445_v48, %v419_v57 }
 0x34d   :  { %1189 = vrot.lane.b32.xlu1 %v1168_v32, %s1432_s30  ;;  %v1730_v58 = vadd.f32 %v475_v52, %v455_v53  ;;  %v1732_v13 = vadd.f32 %v475_v52, %v456_v54  ;;  %v1736_v61 = vadd.f32 %v475_v52, %v457_v17 }
 0x34e   :  { %1184 = vrot.lane.b32.xlu0 %v1163_v46, %s1432_s30  ;;  %v1738_v62 = vadd.f32 %v475_v52, %v458_v59 }
 0x34f   :  { %v1278_v16 = vpack.i.bf16 %v1732_v13, %v482_v35  ;;  %v1273_v63 = vpack.i.bf16 %v1730_v58, %v481_v51  ;;  %v1283_v47 = vpack.i.bf16 %v1736_v61, %v483_v55  ;;  %v1293_v5 = vpack.i.bf16 %v1732_v13, %v1730_v58 }
 0x350   :  { %v1288_v26 = vpack.i.bf16 %v1738_v62, %v484_v36  ;;  %v1298_v4 = vpack.i.bf16 %v1738_v62, %v1736_v61 }
 0x351   :  { %1199 = vrot.lane.b32.xlu1 %v1168_v32, %s1433_s10 }
 0x352   :  { %1194 = vrot.lane.b32.xlu0 %v1163_v46, %s1433_s10 }
 0x355   :  { %1209 = vrot.lane.b32.xlu1 %v1208_v39, %s1434_s11 }
 0x356   :  { %1204 = vrot.lane.b32.xlu0 %v1203_v41, %s1434_s11 }
 0x359   :  { %1219 = vrot.lane.b32.xlu1 %v1696_v42, %s1434_s11 }
 0x35a   :  { %1214 = vrot.lane.b32.xlu0 %v1698_v45, %s1434_s11 }
 0x35d   :  { %1229 = vrot.lane.b32.xlu1 %v1208_v39, %s1435_s12 }
 0x35e   :  { %1224 = vrot.lane.b32.xlu0 %v1203_v41, %s1435_s12 }
 0x361   :  { %1239 = vrot.lane.b32.xlu1 %v1696_v42, %s1435_s12 }
 0x362   :  { %1234 = vrot.lane.b32.xlu0 %v1698_v45, %s1435_s12 }
 0x365   :  { %1249 = vrot.lane.b32.xlu1 %v1208_v39, %s1436_s13 }
 0x366   :  { %1244 = vrot.lane.b32.xlu0 %v1203_v41, %s1436_s13 }
 0x369   :  { %1259 = vrot.lane.b32.xlu1 %v1696_v42, %s1436_s13 }
 0x36a   :  { %1254 = vrot.lane.b32.xlu0 %v1698_v45, %s1436_s13 }
 0x36d   :  { %1269 = vrot.lane.b32.xlu1 %v1208_v39, %s1437_s14 }
 0x36e   :  { %1264 = vrot.lane.b32.xlu0 %v1203_v41, %s1437_s14 }
 0x371   :  { %1279 = vrot.lane.b32.xlu1 %v1278_v16, %s1430_s5 }
 0x372   :  { %1274 = vrot.lane.b32.xlu0 %v1273_v63, %s1430_s5 }
 0x375   :  { %1289 = vrot.lane.b32.xlu1 %v1288_v26, %s1430_s5 }
 0x376   :  { %1284 = vrot.lane.b32.xlu0 %v1283_v47, %s1430_s5 }
 0x379   :  { %1299 = vrot.lane.b32.xlu1 %v1298_v4, %s1434_s11 }
 0x37a   :  { %1294 = vrot.lane.b32.xlu0 %v1293_v5, %s1434_s11 }
 0x37d   :  { %1309 = vrot.lane.b32.xlu1 %v1278_v16, %s1431_s6 }
 0x37e   :  { %1304 = vrot.lane.b32.xlu0 %v1273_v63, %s1431_s6 }
 0x381   :  { %1319 = vrot.lane.b32.xlu1 %v1288_v26, %s1431_s6 }
 0x382   :  { %1314 = vrot.lane.b32.xlu0 %v1283_v47, %s1431_s6 }
 0x385   :  { %1329 = vrot.lane.b32.xlu1 %v1298_v4, %s1435_s12 }
 0x386   :  { %1324 = vrot.lane.b32.xlu0 %v1293_v5, %s1435_s12 }
 0x389   :  { %1339 = vrot.lane.b32.xlu1 %v1278_v16, %s1432_s30 }
 0x38a   :  { %1334 = vrot.lane.b32.xlu0 %v1273_v63, %s1432_s30 }
 0x38d   :  { %1349 = vrot.lane.b32.xlu1 %v1288_v26, %s1432_s30 }
 0x38e   :  { %1344 = vrot.lane.b32.xlu0 %v1283_v47, %s1432_s30 }
 0x391   :  { %1359 = vrot.lane.b32.xlu1 %v1298_v4, %s1436_s13 }
 0x392   :  { %1354 = vrot.lane.b32.xlu0 %v1293_v5, %s1436_s13 }
 0x395   :  { %1369 = vrot.lane.b32.xlu1 %v1278_v16, %s1433_s10 }
 0x396   :  { %1364 = vrot.lane.b32.xlu0 %v1273_v63, %s1433_s10 }
 0x399   :  { %1384 = vrot.lane.b32.xlu1 %v1288_v26, %s1433_s10 }
 0x39a   :  { %1374 = vrot.lane.b32.xlu0 %v1283_v47, %s1433_s10 }
 0x39d   :  { %1389 = vrot.lane.b32.xlu1 %v1696_v42, %s1437_s14 }
 0x39e   :  { %1379 = vrot.lane.b32.xlu0 %v1698_v45, %s1437_s14 }
 0x3a1   :  { %760 = vrot.lane.b32.xlu1 %v1732_v13, %s1437_s14 }
 0x3a2   :  { %754 = vrot.lane.b32.xlu0 %v1730_v58, %s1437_s14 }
 0x3a5   :  { %772 = vrot.lane.b32.xlu1 %v1738_v62, %s1437_s14 }
 0x3a6   :  { %766 = vrot.lane.b32.xlu0 %v1736_v61, %s1437_s14 }
 0x3a9   :  { %803 = vperm.xlu1 %1162, %v794_v7  }
 0x3aa   :  { %798 = vperm.xlu0 %1161, %v793_v14  }
 0x3ae   :  { %808 = vperm.xlu0 %1161, %v795_v15  }
 0x3b7   :  { %v1170_v20 = vpop.permute.xlu1 %1169 }
 0x3b8   :  { %v1165_v21 = vpop.permute.xlu0 %1164  ;;  %v1172_v22 = vunpack.i.h.bf16 %v1170_v20  ;;  %v1171_v23 = vunpack.i.l.bf16 %v1170_v20 }
 0x3b9   :  { %v1167_v0 = vunpack.i.h.bf16 %v1165_v21  ;;  %v1166_v24 = vunpack.i.l.bf16 %v1165_v21 }
 0x3ba   :  { %v516_v2 = vsel %vm515_vm5, %v1171_v23, %v1172_v22 }
 0x3bb   :  { %v522_v25 = vsel %vm515_vm5, %v1166_v24, %v1167_v0  ;;  %v1180_v1 = vpop.permute.xlu1 %1179  ;;  %v519_v3 = vsel %vm515_vm5, %v1167_v0, %v1171_v23  ;;  %v525_v27 = vsel %vm515_vm5, %v1172_v22, %v1166_v24  ;;  %v1101_v29 = vpack.c.bf16 %v516_v2, %v1736_v61 }
 0x3bc   :  { %v1049_v28 = vpack.c.bf16 %v522_v25, %v1730_v58  ;;  %v1175_v30 = vpop.permute.xlu0 %1174  ;;  %v1047_v31 = vpack.c.bf16 %v519_v3, %v1732_v13  ;;  %v1099_v40 = vpack.c.bf16 %v525_v27, %v1738_v62  ;;  %v1182_v53 = vunpack.i.h.bf16 %v1180_v1 }
 0x3bd   :  { %v1177_v50 = vunpack.i.h.bf16 %v1175_v30  ;;  %v1176_v52 = vunpack.i.l.bf16 %v1175_v30  ;;  %v1181_v54 = vunpack.i.l.bf16 %v1180_v1 }
 0x3be   :  { %1048 = vmatprep.subr.bf16.mxu0 %v1047_v31  ;;  %1100 = vmatprep.subr.bf16.mxu1 %v1099_v40 }
 0x3bf   :  { %1050 = vmatpush1.bf16.msra.mxu0 %v1049_v28  ;;  %1102 = vmatpush1.bf16.msra.mxu1 %v1101_v29  ;;  %v1190_v43 = vpop.permute.xlu1 %1189  ;;  %v1866_v26 = vsel %vm589_vm7, %v1176_v52, %v1177_v50  ;;  %v1870_v47 = vsel %vm589_vm7, %v1181_v54, %v1182_v53  ;;  %v1874_v4 = vsel %vm589_vm7, %v1177_v50, %v1181_v54 }
 0x3c0   :  { %v1185_v44 = vpop.permute.xlu0 %1184  ;;  %v1192_v58 = vunpack.i.h.bf16 %v1190_v43  ;;  %v1191_v13 = vunpack.i.l.bf16 %v1190_v43  ;;  %v1878_v5 = vsel %vm589_vm7, %v1182_v53, %v1176_v52 }
 0x3c1   :  { %v1187_v56 = vunpack.i.h.bf16 %v1185_v44  ;;  %v1186_v57 = vunpack.i.l.bf16 %v1185_v44 }
 0x3c2   :  { %v1886_v7 = vsel %vm663_vm8, %v1191_v13, %v1192_v58 }
 0x3c3   :  { %v1200_v46 = vpop.permute.xlu1 %1199  ;;  %v1882_v6 = vsel %vm663_vm8, %v1186_v57, %v1187_v56  ;;  %v1904_v25 = vsel %vm663_vm8, %v1187_v56, %v1191_v13  ;;  %v1908_v1 = vsel %vm663_vm8, %v1192_v58, %v1186_v57 }
 0x3c4   :  { %v1195_v32 = vpop.permute.xlu0 %1194  ;;  %v1202_v11 = vunpack.i.h.bf16 %v1200_v46  ;;  %v1201_v12 = vunpack.i.l.bf16 %v1200_v46 }
 0x3c5   :  { %v1197_v8 = vunpack.i.h.bf16 %v1195_v32  ;;  %v1196_v9 = vunpack.i.l.bf16 %v1195_v32 }
 0x3c6   :  { %v1818_v34 = vsel %vm737_vm6, %v1201_v12, %v1202_v11 }
 0x3c7   :  { %v1814_v33 = vsel %vm737_vm6, %v1196_v9, %v1197_v8  ;;  %v1822_v51 = vsel %vm737_vm6, %v1197_v8, %v1201_v12  ;;  %v1826_v35 = vsel %vm737_vm6, %v1202_v11, %v1196_v9  ;;  %v1830_v36 = vpop.permute.xlu1 %1209 }
 0x3c8   :  { %v1828_v55 = vpop.permute.xlu0 %1204  ;;  %v1212_v61 = vunpack.i.h.bf16 %v1830_v36  ;;  %v1211_v62 = vunpack.i.l.bf16 %v1830_v36 }
 0x3c9   :  { %v1207_v17 = vunpack.i.h.bf16 %v1828_v55  ;;  %v1206_v59 = vunpack.i.l.bf16 %v1828_v55 }
 0x3cb   :  { %v1834_v10 = vpop.permute.xlu1 %1219  ;;  %v1892_v18 = vsel %vm552_vm9, %v1207_v17, %v1212_v61  ;;  %v1896_v20 = vsel %vm552_vm9, %v1206_v59, %v1211_v62 }
 0x3cc   :  { %v1832_v60 = vpop.permute.xlu0 %1214  ;;  %v1222_v15 = vunpack.i.h.bf16 %v1834_v10  ;;  %v1221_v22 = vunpack.i.l.bf16 %v1834_v10  ;;  %v1057_v30 = vpack.c.bf16 %v1892_v18, %v1896_v20 }
 0x3cd   :  { %v1217_v14 = vunpack.i.h.bf16 %v1832_v60  ;;  %v1216_v21 = vunpack.i.l.bf16 %v1832_v60 }
 0x3ce   :  { %v562_v36 = vsel %vm552_vm9, %v1221_v22, %v1206_v59  ;;  %v563_v60 = vsel %vm552_vm9, %v1222_v15, %v1207_v17 }
 0x3cf   :  { %v1838_v38 = vpop.permute.xlu1 %1229  ;;  %v1914_v31 = vsel %vm552_vm9, %v1217_v14, %v1222_v15  ;;  %v1920_v43 = vsel %vm552_vm9, %v1216_v21, %v1221_v22  ;;  %v556_v8 = vsel %vm552_vm9, %v1211_v62, %v1216_v21  ;;  %v557_v55 = vsel %vm552_vm9, %v1212_v61, %v1217_v14 }
 0x3d0   :  { %v1836_v37 = vpop.permute.xlu0 %1224  ;;  %v1232_v0 = vunpack.i.h.bf16 %v1838_v38  ;;  %v1231_v44 = vunpack.i.l.bf16 %v1838_v38 }
 0x3d1   :  { %v1227_v23 = vunpack.i.h.bf16 %v1836_v37  ;;  %v1226_v40 = vunpack.i.l.bf16 %v1836_v37 }
 0x3d3   :  { %v1842_v41 = vpop.permute.xlu1 %1239  ;;  %v1934_v9 = vsel %vm626_vm10, %v1227_v23, %v1232_v0  ;;  %v1944_v54 = vsel %vm626_vm10, %v1226_v40, %v1231_v44 }
 0x3d4   :  { %v1840_v39 = vpop.permute.xlu0 %1234  ;;  %v1242_v57 = vunpack.i.h.bf16 %v1842_v41 }
 0x3d5   :  { %v1237_v56 = vunpack.i.h.bf16 %v1840_v39 }
 0x3d6   :  { %v637_v38 = vsel %vm626_vm10, %v1242_v57, %v1227_v23 }
 0x3d7   :  { %v1846_v45 = vpop.permute.xlu1 %1249 }
 0x3d8   :  { %v1844_v42 = vpop.permute.xlu0 %1244  ;;  %v1252_v37 = vunpack.i.h.bf16 %v1846_v45  ;;  %v1251_v23 = vunpack.i.l.bf16 %v1846_v45 }
 0x3db   :  { %v1852_v49 = vpop.permute.xlu1 %1259 }
 0x3dc   :  { %v1850_v48 = vpop.permute.xlu0 %1254 }
 0x3df   :  { %v1862_v63 = vpop.permute.xlu1 %1269 }
 0x3e0   :  { %v1860_v16 = vpop.permute.xlu0 %1264 }
 0x3e3   :  { %v1280_v2 = vpop.permute.xlu1 %1279 }
 0x3e4   :  { %v1275_v24 = vpop.permute.xlu0 %1274  ;;  %v1282_v28 = vunpack.i.h.bf16 %v1280_v2  ;;  %v1281_v29 = vunpack.i.l.bf16 %v1280_v2 }
 0x3e5   :  { %v1277_v3 = vunpack.i.h.bf16 %v1275_v24  ;;  %v1276_v27 = vunpack.i.l.bf16 %v1275_v24 }
 0x3e7   :  { %v524_v32 = vsel %vm515_vm5, %v1277_v3, %v1282_v28  ;;  %v523_v46 = vsel %vm515_vm5, %v1276_v27, %v1281_v29  ;;  %v1290_v12 = vpop.permute.xlu1 %1289 }
 0x3e8   :  { %v1285_v11 = vpop.permute.xlu0 %1284  ;;  %v1292_v52 = vunpack.i.h.bf16 %v1290_v12  ;;  %v1291_v53 = vunpack.i.l.bf16 %v1290_v12  ;;  %v1053_v58 = vpack.c.bf16 %v524_v32, %v523_v46  ;;  %v1236_v12 = vunpack.i.l.bf16 %v1840_v39 }
 0x3e9   :  { %v1287_v10 = vunpack.i.h.bf16 %v1285_v11  ;;  %v1286_v50 = vunpack.i.l.bf16 %v1285_v11  ;;  %v1257_v39 = vunpack.i.h.bf16 %v1850_v48 }
 0x3ea   :  { %v526_v22 = vsel %vm515_vm5, %v1291_v53, %v1276_v27  ;;  %v527_v24 = vsel %vm515_vm5, %v1292_v52, %v1277_v3  ;;  %v1069_v27 = vpack.c.bf16 %v1934_v9, %v1944_v54 }
 0x3eb   :  { %v518_v13 = vsel %vm515_vm5, %v1287_v10, %v1292_v52  ;;  %v517_v59 = vsel %vm515_vm5, %v1286_v50, %v1291_v53  ;;  %v520_v17 = vsel %vm515_vm5, %v1281_v29, %v1286_v50  ;;  %v521_v61 = vsel %vm515_vm5, %v1282_v28, %v1287_v10  ;;  %v1300_v15 = vpop.permute.xlu1 %1299 }
 0x3ec   :  { %v1105_v62 = vpack.c.bf16 %v518_v13, %v517_v59  ;;  %v1295_v14 = vpop.permute.xlu0 %1294  ;;  %v1051_v21 = vpack.c.bf16 %v521_v61, %v520_v17  ;;  %v1302_v46 = vunpack.i.h.bf16 %v1300_v15  ;;  %v1301_v11 = vunpack.i.l.bf16 %v1300_v15 }
 0x3ed   :  { %v1297_v2 = vunpack.i.h.bf16 %v1295_v14  ;;  %v1296_v32 = vunpack.i.l.bf16 %v1295_v14  ;;  %v1241_v29 = vunpack.i.l.bf16 %v1842_v41  ;;  %v1103_v28 = vpack.c.bf16 %v527_v24, %v526_v22 }
 0x3ee   :  { %1052 = vmatprep.subr.bf16.mxu0 %v1051_v21  ;;  %v1055_v10 = vpack.c.bf16 %v557_v55, %v556_v8  ;;  %v1109_v50 = vpack.c.bf16 %v1914_v31, %v1920_v43  ;;  %v1107_v53 = vpack.c.bf16 %v563_v60, %v562_v36  ;;  %v1970_v52 = vsel %vm626_vm10, %v1237_v56, %v1242_v57 }
 0x3ef   :  { %1054 = vmatpush1.bf16.msra.mxu0 %v1053_v58  ;;  %v558_v3 = vsel %vm552_vm9, %v1297_v2, %v1301_v11  ;;  %v561_v8 = vsel %vm552_vm9, %v1296_v32, %v1297_v2  ;;  %1104 = vmatprep.subr.bf16.mxu1 %v1103_v28  ;;  %v1310_v31 = vpop.permute.xlu1 %1309  ;;  %v564_v43 = vsel %vm552_vm9, %v1302_v46, %v1296_v32  ;;  %v1262_v41 = vunpack.i.h.bf16 %v1852_v49 }
 0x3f0   :  { %v1305_v55 = vpop.permute.xlu0 %1304  ;;  %1056 = vmatprep.subr.bf16.mxu0 %v1055_v10  ;;  %1106 = vmatpush1.bf16.msra.mxu1 %v1105_v62  ;;  %v1312_v58 = vunpack.i.h.bf16 %v1310_v31  ;;  %v1311_v13 = vunpack.i.l.bf16 %v1310_v31  ;;  %v1059_v59 = vpack.c.bf16 %v1874_v4, %v558_v3  ;;  %v630_v17 = vsel %vm626_vm10, %v1231_v44, %v1236_v12 }
 0x3f1   :  { %v1307_v36 = vunpack.i.h.bf16 %v1305_v55  ;;  %v1306_v60 = vunpack.i.l.bf16 %v1305_v55  ;;  %1108 = vmatprep.subr.bf16.mxu1 %v1107_v53  ;;  %v631_v61 = vsel %vm626_vm10, %v1232_v0, %v1237_v56  ;;  %v1990_v62 = vsel %vm626_vm10, %v1241_v29, %v1226_v40 }
 0x3f2   :  { %v555_v14 = vsel %vm552_vm9, %v1301_v11, %v1302_v46  ;;  %v1247_v0 = vunpack.i.h.bf16 %v1844_v42  ;;  %v1246_v40 = vunpack.i.l.bf16 %v1844_v42  ;;  %v1061_v56 = vpack.c.bf16 %v1866_v26, %v561_v8 }
 0x3f3   :  { %v598_v4 = vsel %vm589_vm7, %v1307_v36, %v1312_v58  ;;  %v597_v44 = vsel %vm589_vm7, %v1306_v60, %v1311_v13  ;;  %1058 = vmatpush1.bf16.msra.mxu0 %v1057_v30  ;;  %v1320_v21 = vpop.permute.xlu1 %1319  ;;  %v1111_v22 = vpack.c.bf16 %v1878_v5, %v564_v43  ;;  %v1113_v57 = vpack.c.bf16 %v1870_v47, %v555_v14 }
 0x3f4   :  { %v1315_v15 = vpop.permute.xlu0 %1314  ;;  %1060 = vmatprep.subr.bf16.mxu0 %v1059_v59  ;;  %1110 = vmatpush1.bf16.msra.mxu1 %v1109_v50  ;;  %v1322_v20 = vunpack.i.h.bf16 %v1320_v21  ;;  %v1321_v30 = vunpack.i.l.bf16 %v1320_v21  ;;  %v1065_v2 = vpack.c.bf16 %v598_v4, %v597_v44  ;;  %v627_v31 = vsel %vm626_vm10, %v1236_v12, %v1241_v29 }
 0x3f5   :  { %v1317_v24 = vunpack.i.h.bf16 %v1315_v15  ;;  %v1316_v18 = vunpack.i.l.bf16 %v1315_v15  ;;  %1112 = vmatprep.subr.bf16.mxu1 %v1111_v22  ;;  %v2034_v43 = vsel %vm700_vm11, %v1247_v0, %v1252_v37  ;;  %v1256_v29 = vunpack.i.l.bf16 %v1850_v48 }
 0x3f6   :  { %v600_v47 = vsel %vm589_vm7, %v1321_v30, %v1306_v60  ;;  %v601_v50 = vsel %vm589_vm7, %v1322_v20, %v1307_v36  ;;  %v1067_v60 = vpack.c.bf16 %v631_v61, %v630_v17  ;;  %v1119_v61 = vpack.c.bf16 %v637_v38, %v1990_v62 }
 0x3f7   :  { %v592_v26 = vsel %vm589_vm7, %v1317_v24, %v1322_v20  ;;  %v591_v32 = vsel %vm589_vm7, %v1316_v18, %v1321_v30  ;;  %1062 = vmatpush1.bf16.msra.mxu0 %v1061_v56  ;;  %v594_v5 = vsel %vm589_vm7, %v1311_v13, %v1316_v18  ;;  %v595_v46 = vsel %vm589_vm7, %v1312_v58, %v1317_v24  ;;  %v1330_v45 = vpop.permute.xlu1 %1329 }
 0x3f8   :  { %v1117_v11 = vpack.c.bf16 %v592_v26, %v591_v32  ;;  %v1325_v28 = vpop.permute.xlu0 %1324  ;;  %v1063_v10 = vpack.c.bf16 %v595_v46, %v594_v5  ;;  %1114 = vmatpush1.bf16.msra.mxu1 %v1113_v57  ;;  %v1332_v8 = vunpack.i.h.bf16 %v1330_v45  ;;  %v1331_v55 = vunpack.i.l.bf16 %v1330_v45 }
 0x3f9   :  { %v1327_v53 = vunpack.i.h.bf16 %v1325_v28  ;;  %v1326_v3 = vunpack.i.l.bf16 %v1325_v28  ;;  %v1115_v36 = vpack.c.bf16 %v601_v50, %v600_v47  ;;  %v2040_v58 = vsel %vm700_vm11, %v1246_v40, %v1251_v23 }
 0x3fa   :  { %1064 = vmatprep.subr.bf16.mxu0 %v1063_v10  ;;  %v1121_v21 = vpack.c.bf16 %v1970_v52, %v627_v31  ;;  %v1081_v48 = vpack.c.bf16 %v2034_v43, %v2040_v58  ;;  %v1261_v22 = vunpack.i.l.bf16 %v1852_v49  ;;  %v2059_v62 = vsel %vm700_vm11, %v1257_v39, %v1262_v41 }
 0x3fb   :  { %1066 = vmatpush1.bf16.msra.mxu0 %v1065_v2  ;;  %v632_v12 = vsel %vm626_vm10, %v1327_v53, %v1331_v55  ;;  %v635_v13 = vsel %vm626_vm10, %v1326_v3, %v1327_v53  ;;  %1116 = vmatprep.subr.bf16.mxu1 %v1115_v36  ;;  %v1340_v17 = vpop.permute.xlu1 %1339  ;;  %v638_v14 = vsel %vm626_vm10, %v1332_v8, %v1326_v3 }
 0x3fc   :  { %v1335_v59 = vpop.permute.xlu0 %1334  ;;  %1068 = vmatprep.subr.bf16.mxu0 %v1067_v60  ;;  %1118 = vmatpush1.bf16.msra.mxu1 %v1117_v11  ;;  %v1342_v56 = vunpack.i.h.bf16 %v1340_v17  ;;  %v1341_v15 = vunpack.i.l.bf16 %v1340_v17  ;;  %v1071_v24 = vpack.c.bf16 %v1904_v25, %v632_v12  ;;  %v629_v38 = vsel %vm626_vm10, %v1331_v55, %v1332_v8 }
 0x3fd   :  { %v1337_v4 = vunpack.i.h.bf16 %v1335_v59  ;;  %v1336_v44 = vunpack.i.l.bf16 %v1335_v59  ;;  %1120 = vmatprep.subr.bf16.mxu1 %v1119_v61  ;;  %v1073_v49 = vpack.c.bf16 %v1882_v6, %v635_v13  ;;  %v1123_v30 = vpack.c.bf16 %v1908_v1, %v638_v14 }
 0x3fe   :  { %v704_v57 = vsel %vm700_vm11, %v1251_v23, %v1256_v29  ;;  %v705_v2 = vsel %vm700_vm11, %v1252_v37, %v1257_v39  ;;  %v1125_v9 = vpack.c.bf16 %v1886_v7, %v629_v38  ;;  %v710_v6 = vsel %vm700_vm11, %v1261_v22, %v1246_v40 }
 0x3ff   :  { %v672_v18 = vsel %vm663_vm8, %v1337_v4, %v1342_v56  ;;  %v671_v52 = vsel %vm663_vm8, %v1336_v44, %v1341_v15  ;;  %1070 = vmatpush1.bf16.msra.mxu0 %v1069_v27  ;;  %v1350_v20 = vpop.permute.xlu1 %1349  ;;  %v711_v1 = vsel %vm700_vm11, %v1262_v41, %v1247_v0  ;;  %v701_v3 = vsel %vm700_vm11, %v1256_v29, %v1261_v22 }
 0x400   :  { %v1345_v25 = vpop.permute.xlu0 %1344  ;;  %1072 = vmatprep.subr.bf16.mxu0 %v1071_v24  ;;  %1122 = vmatpush1.bf16.msra.mxu1 %v1121_v21  ;;  %v1352_v5 = vunpack.i.h.bf16 %v1350_v20  ;;  %v1351_v46 = vunpack.i.l.bf16 %v1350_v20  ;;  %v1077_v54 = vpack.c.bf16 %v672_v18, %v671_v52  ;;  %v1079_v55 = vpack.c.bf16 %v705_v2, %v704_v57 }
 0x401   :  { %v1347_v26 = vunpack.i.h.bf16 %v1345_v25  ;;  %v1346_v32 = vunpack.i.l.bf16 %v1345_v25  ;;  %1124 = vmatprep.subr.bf16.mxu1 %v1123_v30  ;;  %v1131_v31 = vpack.c.bf16 %v711_v1, %v710_v6  ;;  %v1266_v18 = vunpack.i.l.bf16 %v1860_v16 }
 0x402   :  { %v674_v0 = vsel %vm663_vm8, %v1351_v46, %v1336_v44  ;;  %v675_v45 = vsel %vm663_vm8, %v1352_v5, %v1337_v4  ;;  %v1272_v52 = vunpack.i.h.bf16 %v1862_v63 }
 0x403   :  { %v666_v27 = vsel %vm663_vm8, %v1347_v26, %v1352_v5  ;;  %v665_v37 = vsel %vm663_vm8, %v1346_v32, %v1351_v46  ;;  %1074 = vmatpush1.bf16.msra.mxu0 %v1073_v49  ;;  %v668_v7 = vsel %vm663_vm8, %v1341_v15, %v1346_v32  ;;  %v669_v23 = vsel %vm663_vm8, %v1342_v56, %v1347_v26  ;;  %v1360_v28 = vpop.permute.xlu1 %1359 }
 0x404   :  { %v1129_v11 = vpack.c.bf16 %v666_v27, %v665_v37  ;;  %v1355_v40 = vpop.permute.xlu0 %1354  ;;  %v1075_v42 = vpack.c.bf16 %v669_v23, %v668_v7  ;;  %1126 = vmatpush1.bf16.msra.mxu1 %v1125_v9  ;;  %v1362_v50 = vunpack.i.h.bf16 %v1360_v28  ;;  %v1361_v53 = vunpack.i.l.bf16 %v1360_v28 }
 0x405   :  { %v1357_v10 = vunpack.i.h.bf16 %v1355_v40  ;;  %v1356_v47 = vunpack.i.l.bf16 %v1355_v40  ;;  %v1127_v8 = vpack.c.bf16 %v675_v45, %v674_v0  ;;  %v1133_v15 = vpack.c.bf16 %v2059_v62, %v701_v3 }
 0x406   :  { %1076 = vmatprep.subr.bf16.mxu0 %v1075_v42  ;;  %v703_v60 = vsel %vm700_vm11, %v1361_v53, %v1362_v50  ;;  %v1271_v49 = vunpack.i.l.bf16 %v1862_v63 }
 0x407   :  { %v709_v36 = vsel %vm700_vm11, %v1356_v47, %v1357_v10  ;;  %1078 = vmatpush1.bf16.msra.mxu0 %v1077_v54  ;;  %v706_v39 = vsel %vm700_vm11, %v1357_v10, %v1361_v53  ;;  %v712_v41 = vsel %vm700_vm11, %v1362_v50, %v1356_v47  ;;  %v1137_v29 = vpack.c.bf16 %v1818_v34, %v703_v60  ;;  %v1370_v59 = vpop.permute.xlu1 %1369  ;;  %v790_v60 = vld [vmem:[%s2198_s7 + $0x18] sm:$0xff] }
 0x408   :  { %v1085_v12 = vpack.c.bf16 %v1814_v33, %v709_v36  ;;  %1128 = vmatprep.subr.bf16.mxu1 %v1127_v8  ;;  %v1365_v13 = vpop.permute.xlu0 %1364  ;;  %1080 = vmatprep.subr.bf16.mxu0 %v1079_v55  ;;  %v1083_v17 = vpack.c.bf16 %v1822_v51, %v706_v39  ;;  %v1372_v4 = vunpack.i.h.bf16 %v1370_v59  ;;  %v1371_v44 = vunpack.i.l.bf16 %v1370_v59  ;;  %v787_v55 = vld [vmem:[%s2198_s7] sm:$0xff]  ;;  %v789_v39 = vld [vmem:[%s2198_s7 + $0x10] sm:$0xff] }
 0x409   :  { %1130 = vmatpush1.bf16.msra.mxu1 %v1129_v11  ;;  %v1367_v61 = vunpack.i.h.bf16 %v1365_v13  ;;  %v1366_v14 = vunpack.i.l.bf16 %v1365_v13  ;;  %v1135_v56 = vpack.c.bf16 %v1826_v35, %v712_v41  ;;  %v1267_v51 = vunpack.i.h.bf16 %v1860_v16  ;;  %v791_v41 = vld [vmem:[%s2198_s7 + $0x20] sm:$0xff]  ;;  %s1438_s7 = smov [#allocation2]  }
 0x40a   :  { %1132 = vmatprep.subr.bf16.mxu1 %v1131_v31  ;;  %v781_v6 = vsel %vm774_vm12, %v1266_v18, %v1271_v49  ;;  %s1004_s27 = sshll.u32 %s1438_s7, 4  ;;  %s1005_s27 = int_to_ptr.vmem [resolvable:$true] %s1004_s27 }
 0x40b   :  { %v746_v33 = vsel %vm737_vm6, %v1367_v61, %v1372_v4  ;;  %v745_v34 = vsel %vm737_vm6, %v1366_v14, %v1371_v44  ;;  %1082 = vmatpush1.bf16.msra.mxu0 %v1081_v48  ;;  %v1385_v22 = vpop.permute.xlu1 %1384  ;;  %v782_v54 = vsel %vm774_vm12, %v1267_v51, %v1272_v52  ;;  %s1403_s28 = scalar_lea.vmem %s1005_s27, 1536  ;;  %p1408_p1 = scmp.lt.s32.totalorder %s1005_s27, %s1005_s27 }
 0x40c   :  { %v1375_v21 = vpop.permute.xlu0 %1374  ;;  %1084 = vmatprep.subr.bf16.mxu0 %v1083_v17  ;;  %v1387_v62 = vunpack.i.h.bf16 %v1385_v22  ;;  %v1386_v38 = vunpack.i.l.bf16 %v1385_v22  ;;  %v1089_v43 = vpack.c.bf16 %v746_v33, %v745_v34  ;;  %v1093_v45 = vpack.c.bf16 %v782_v54, %v781_v6  ;;  %p1404_p0 = scmp.ne.s32.totalorder %s1005_s27, %s1403_s28  ;;  %p1409_p2 = scmp.lt.s32.totalorder %s1403_s28, %s1403_s28 }
 0x40d   :  { %1134 = vmatpush1.bf16.msra.mxu1 %v1133_v15  ;;  %v1377_v35 = vunpack.i.h.bf16 %v1375_v21  ;;  %v1376_v24 = vunpack.i.l.bf16 %v1375_v21 }
 0x40e   :  { %1136 = vmatprep.subr.bf16.mxu1 %v1135_v56  ;;  %v748_v63 = vsel %vm737_vm6, %v1386_v38, %v1366_v14  ;;  %v749_v26 = vsel %vm737_vm6, %v1387_v62, %v1367_v61  ;;  %p1410_p3 = por %p1409_p2, %p1408_p1 }
 0x40f   :  { %v740_v58 = vsel %vm737_vm6, %v1377_v35, %v1387_v62  ;;  %v739_v48 = vsel %vm737_vm6, %v1376_v24, %v1386_v38  ;;  %1086 = vmatpush1.bf16.msra.mxu0 %v1085_v12  ;;  %v742_v25 = vsel %vm737_vm6, %v1371_v44, %v1376_v24  ;;  %v743_v20 = vsel %vm737_vm6, %v1372_v4, %v1377_v35  ;;  %v1390_v57 = vpop.permute.xlu1 %1389 }
 0x410   :  { %v1141_v16 = vpack.c.bf16 %v740_v58, %v739_v48  ;;  %v1380_v30 = vpop.permute.xlu0 %1379  ;;  %v1087_v2 = vpack.c.bf16 %v743_v20, %v742_v25  ;;  %v1392_v46 = vunpack.i.h.bf16 %v1390_v57  ;;  %v1391_v9 = vunpack.i.l.bf16 %v1390_v57  ;;  %p1411_p4 = pnand %p1410_p3, %p1404_p0 }
 0x411   :  { %1138 = vmatpush1.bf16.msra.mxu1 %v1137_v29  ;;  %v1382_v32 = vunpack.i.h.bf16 %v1380_v30  ;;  %v1381_v5 = vunpack.i.l.bf16 %v1380_v30  ;;  %v1139_v1 = vpack.c.bf16 %v749_v26, %v748_v63 }
 0x412   :  { %1088 = vmatprep.subr.bf16.mxu0 %v1087_v2  ;;  %v784_v42 = vsel %vm774_vm12, %v1391_v9, %v1266_v18  ;;  %v785_v0 = vsel %vm774_vm12, %v1392_v46, %v1267_v51 }
 0x413   :  { %v776_v27 = vsel %vm774_vm12, %v1382_v32, %v1392_v46  ;;  %v775_v37 = vsel %vm774_vm12, %v1381_v5, %v1391_v9  ;;  %1090 = vmatpush1.bf16.msra.mxu0 %v1089_v43  ;;  %v778_v7 = vsel %vm774_vm12, %v1271_v49, %v1381_v5  ;;  %v779_v23 = vsel %vm774_vm12, %v1272_v52, %v1382_v32  ;;  %v761_v40 = vpop.permute.xlu1 %760 }
 0x414   :  { %1140 = vmatprep.subr.bf16.mxu1 %v1139_v1  ;;  %v755_v11 = vpop.permute.xlu0 %754  ;;  %v1091_v28 = vpack.c.bf16 %v779_v23, %v778_v7  ;;  %v1145_v10 = vpack.c.bf16 %v776_v27, %v775_v37  ;;  %v1143_v47 = vpack.c.bf16 %v785_v0, %v784_v42 }
 0x415   :  { %1142 = vmatpush1.bf16.msra.mxu1 %v1141_v16  ;;  %v783_v31 = vsel %vm774_vm12, %v755_v11, %v761_v40 }
 0x416   :  { %1092 = vmatprep.subr.bf16.mxu0 %v1091_v28  ;;  %1144 = vmatprep.subr.bf16.mxu1 %v1143_v47 }
 0x417   :  { %1094 = vmatpush1.bf16.msra.mxu0 %v1093_v45  ;;  %v773_v53 = vpop.permute.xlu1 %772 }
 0x418   :  { %v767_v50 = vpop.permute.xlu0 %766  ;;  %v786_v8 = vsel %vm774_vm12, %v773_v53, %v755_v11 }
 0x419   :  { %1146 = vmatpush1.bf16.msra.mxu1 %v1145_v10  ;;  %v780_v3 = vsel %vm774_vm12, %v761_v40, %v767_v50  ;;  %v777_v36 = vsel %vm774_vm12, %v767_v50, %v773_v53 }
 0x41a   :  { %873 = vmatprep.subr.mxu0 %v780_v3  ;;  %956 = vmatprep.subr.mxu1 %v786_v8 }
 0x41b   :  { %874 = vmatpush1.msra.mxu0 %v783_v31 }
 0x41c   :  { %886 = vmatmul.mubr.f32.vlgmr.msra.gmra.mrb[6].mxu0 %v787_v55 }
 0x41d   :  { %957 = vmatpush1.msra.mxu1 %v777_v36  ;;  %1026 = vmatprep.mubr.msk.f32.mxu0 %vm811_vm4, %v790_v60 }
 0x41e   :  { %969 = vmatmul.mubr.f32.vlgmr.msra.gmra.mrb[6].mxu1 %v787_v55 }
 0x41f   :  { %1029 = vmatprep.mubr.msk.f32.mxu1 %vm811_vm4, %v790_v60 }
 0x420   :  { %892 = vmatmul.mubr.f32.gmra.mrb[8].mxu0 %v789_v39 }
 0x421   :  { %1027 = vmatprep.mubr.msk.f32.mxu0 %vm811_vm4, %v792_v19 }
 0x422   :  { %975 = vmatmul.mubr.f32.gmra.mrb[8].mxu1 %v789_v39 }
 0x423   :  { %1030 = vmatprep.mubr.msk.f32.mxu1 %vm811_vm4, %v792_v19 }
 0x424   :  { %898 = vmatmul.mubr.f32.gmra.mrb[10].mxu0 %v791_v41 }
 0x426   :  { %981 = vmatmul.mubr.f32.gmra.mrb[10].mxu1 %v791_v41 }
 0x428   :  { %v804_v44 = vpop.permute.xlu1 %803 }
 0x429   :  { %v799_v12 = vpop.permute.xlu0 %798 }
 0x42d   :  { %v809_v24 = vpop.permute.xlu0 %808 }
 0x4ef   :  { %v887_v29 = vpop.f32.mrb[6].mxu0 }
 0x4f0   :  { %v888_v13 = vadd.f32 %v887_v29, %v799_v12  ;;  %v889_v59 = vpop.f32.mrb[7].mxu0 }
 0x4f1   :  { %v970_v17 = vpop.f32.mrb[6].mxu1  ;;  %v890_v61 = vadd.f32 %v889_v59, %v799_v12 }
 0x4f2   :  { %987 = vst [vmem:[#allocation2] sm:$0xff] %v888_v13  ;;  %v971_v14 = vadd.f32 %v970_v17, %v799_v12  ;;  %v972_v4 = vpop.f32.mrb[7].mxu1 }
 0x4f3   :  { %988 = vst [vmem:[#allocation2 + $0x8] sm:$0xff] %v890_v61  ;;  %v973_v56 = vadd.f32 %v972_v4, %v799_v12  ;;  %v893_v15 = vpop.f32.mrb[8].mxu0 }
 0x4f4   :  { %989 = vst [vmem:[#allocation2 + $0x10] sm:$0xff] %v971_v14  ;;  %v894_v33 = vadd.f32 %v893_v15, %v804_v44  ;;  %v895_v34 = vpop.f32.mrb[9].mxu0 }
 0x4f5   :  { %990 = vst [vmem:[#allocation2 + $0x18] sm:$0xff] %v973_v56  ;;  %v976_v51 = vpop.f32.mrb[8].mxu1  ;;  %v896_v21 = vadd.f32 %v895_v34, %v804_v44 }
 0x4f6   :  { %991 = vst [vmem:[#allocation2 + $0x20] sm:$0xff] %v894_v33  ;;  %v977_v22 = vadd.f32 %v976_v51, %v804_v44  ;;  %v978_v35 = vpop.f32.mrb[9].mxu1 }
 0x4f7   :  { %992 = vst [vmem:[#allocation2 + $0x28] sm:$0xff] %v896_v21  ;;  %v979_v62 = vadd.f32 %v978_v35, %v804_v44  ;;  %v899_v38 = vpop.f32.mrb[10].mxu0 }
 0x4f8   :  { %993 = vst [vmem:[#allocation2 + $0x30] sm:$0xff] %v977_v22  ;;  %v900_v18 = vadd.f32 %v899_v38, %v809_v24  ;;  %v901_v52 = vpop.f32.mrb[11].mxu0 }
 0x4f9   :  { %994 = vst [vmem:[#allocation2 + $0x38] sm:$0xff] %v979_v62  ;;  %v982_v49 = vpop.f32.mrb[10].mxu1  ;;  %v902_v43 = vadd.f32 %v901_v52, %v809_v24 }
 0x4fa   :  { %995 = vst [vmem:[#allocation2 + $0x40] sm:$0xff] %v900_v18  ;;  %v983_v58 = vadd.f32 %v982_v49, %v809_v24  ;;  %v984_v48 = vpop.f32.mrb[11].mxu1 }
 0x4fb   :  { %996 = vst [vmem:[#allocation2 + $0x48] sm:$0xff] %v902_v43  ;;  %v985_v25 = vadd.f32 %v984_v48, %v809_v24 }
 0x4fc   :  { %997 = vst [vmem:[#allocation2 + $0x50] sm:$0xff] %v983_v58 }
 0x4fd   :  { %998 = vst [vmem:[#allocation2 + $0x58] sm:$0xff] %v985_v25 }
 0x4fe   :  { %1414 = shalt.err (!%p1411_p4)
}
 0x4ff   :  { %s1415_s6 = scalar_lea.hbm %s2200_s9, 1536 }
 0x500   :  { %p1416_p5 = scmp.ne.s32.totalorder %s2200_s9, %s1415_s6  ;;  %p1419_p6 = scmp.lt.u32.totalorder %s1415_s6, %s2200_s9 }
 0x502   :  { %p1421_p7 = pnand %p1419_p6, %p1416_p5 }
 0x504   :  { %1424 = shalt.err (!%p1421_p7)
}
 0x505   :  { %s1439_s13 = smov 512   ;;  %s1440_s14 = smov 32  }
 0x506   :  { %1010 = dma.vmem_to_hbm [thread:$0]  %s1005_s27, 1536, %s2200_s9, [#allocation3], %s1439_s13, %s1439_s13, %s1440_s14  }
 0x507   :  { %1425 = dma.done.wait [#allocation3], 1536  }
 0x508   :  { %1426 = vsyncadd [#allocation3], 4294965760 }
 0x509   :  { %1014 = vsyncpa [#allocation3], 1 }

</bundles_post_ra>
